<compile_context>
chip_gen: v6e
topology: v6e:2x2x1
jax: 0.10.0
libtpu: 0.0.40
codegen_flags: <defaults>
</compile_context>

<pallas_src>
import functools

import jax
import jax.numpy as jnp
import numpy as np
from jax.experimental import pallas as pl
from jax.experimental.pallas import tpu as pltpu

EPS = 1e-5  # nn.BatchNorm1d default


def _ceil_to(a, b):
    return -(-a // b) * b


# --------------------------------------------------------------------------
# Tiny grid-less prologue: fold the conditioning branch into per-batch biases.
# --------------------------------------------------------------------------
def _c_branch_kernel(c_ref, g1c_ref, b1c_ref, g2c_ref, b2c_ref,
                     wbc_ref, bb_ref, wrc_ref, br_ref,
                     cb1_ref, cb2_ref):
    # c_ref: (B, c_dim) f32.  BN stats over the (B*N, c_dim) broadcast rows
    # equal stats over the B compact rows (each row repeats exactly N times),
    # and the same mean/var serves both norm_base and norm_residual.
    c = c_ref[...]
    mean = jnp.mean(c, axis=0, keepdims=True)
    var = jnp.mean((c - mean) ** 2, axis=0, keepdims=True)   # biased (training)
    cn = (c - mean) * jax.lax.rsqrt(var + EPS)
    h1 = jnp.maximum(cn * g1c_ref[...] + b1c_ref[...], 0.0).astype(jnp.bfloat16)
    h2 = jnp.maximum(cn * g2c_ref[...] + b2c_ref[...], 0.0).astype(jnp.bfloat16)
    cb1_ref[...] = (jnp.dot(h1, wbc_ref[...], preferred_element_type=jnp.float32)
                    + bb_ref[...])
    cb2_ref[...] = (jnp.dot(h2, wrc_ref[...], preferred_element_type=jnp.float32)
                    + br_ref[...])


# --------------------------------------------------------------------------
# Pass 1: per-tile partial sum / sum-of-squares of x (zero-padded rows add 0).
# --------------------------------------------------------------------------
def _feature_stats_kernel(x_ref, s_ref, q_ref):
    x = x_ref[0]                                          # (tn, D) f32
    s_ref[0] = jnp.sum(x, axis=0, keepdims=True)
    q_ref[0] = jnp.sum(x * x, axis=0, keepdims=True)


# --------------------------------------------------------------------------
# Pass 2: compute net per tile (BN1 fold + relu + bf16 dot + per-batch bias)
# and emit its per-tile partial stats (padded rows masked out).
# --------------------------------------------------------------------------
def _net_stats_kernel(x_ref, a1_ref, d1_ref, wbx_ref, cb1_ref,
                      s_ref, q_ref, *, tn, n_valid):
    hx = jnp.maximum(x_ref[0] * a1_ref[...] + d1_ref[...], 0.0)
    net = (jnp.dot(hx.astype(jnp.bfloat16), wbx_ref[...],
                   preferred_element_type=jnp.float32) + cb1_ref[0])
    if n_valid is not None:   # static: only emitted when N needs padding
        row = (pl.program_id(1) * tn
               + jax.lax.broadcasted_iota(jnp.int32, (tn, 1), 0))
        net = jnp.where(row < n_valid, net, 0.0)
    s_ref[0] = jnp.sum(net, axis=0, keepdims=True)
    q_ref[0] = jnp.sum(net * net, axis=0, keepdims=True)


# --------------------------------------------------------------------------
# Pass 3: recompute net, apply BN2 fold + relu + residual dot, add shortcut.
# --------------------------------------------------------------------------
def _out_kernel(x_ref, a1_ref, d1_ref, wbx_ref, cb1_ref,
                a2_ref, d2_ref, wrn_ref, cb2_ref, *rest, use_proj):
    if use_proj:
        wp_ref, o_ref = rest
    else:
        (o_ref,) = rest
    x = x_ref[0]                                          # (tn, x_dim) f32
    hx = jnp.maximum(x * a1_ref[...] + d1_ref[...], 0.0)
    net = (jnp.dot(hx.astype(jnp.bfloat16), wbx_ref[...],
                   preferred_element_type=jnp.float32) + cb1_ref[0])
    hn = jnp.maximum(net * a2_ref[...] + d2_ref[...], 0.0)
    dx = (jnp.dot(hn.astype(jnp.bfloat16), wrn_ref[...],
                  preferred_element_type=jnp.float32) + cb2_ref[0])
    if use_proj:
        xs = jnp.dot(x.astype(jnp.bfloat16), wp_ref[...],
                     preferred_element_type=jnp.float32)
    else:
        xs = x                                            # Identity shortcut
    o_ref[0] = xs + dx


# --------------------------------------------------------------------------
# Wrapper
# --------------------------------------------------------------------------
@functools.partial(jax.jit, static_argnames=("block_n",))
def concat_resnet_block(x, c, params, *, block_n=512):
    """x: (B, N, x_dim); c: (B, 1, c_dim) or (B, c_dim). Returns (B, N, o_dim)."""
    B, N, x_dim = x.shape
    if c.ndim == 2:
        c = c[:, None, :]
    assert c.shape[0] == B and c.shape[1] == 1, "c must be (B, 1, c_dim)"
    h_dim = params["wbx"].shape[1]
    wp = params.get("wp", None)
    use_proj = wp is not None
    o_dim = wp.shape[1] if use_proj else x_dim

    f32, bf16 = jnp.float32, jnp.bfloat16
    x = x.astype(f32)
    c2 = c[:, 0, :].astype(f32)                 # compact (B, c_dim); no M broadcast

    # --- tile the point dimension N (multiple of 8 sublanes) ---
    tn = min(block_n, _ceil_to(N, 8))
    tn = _ceil_to(tn, 8)
    n_pad = _ceil_to(N, tn)
    nt = n_pad // tn
    if n_pad != N:
        x = jnp.pad(x, ((0, 0), (0, n_pad - N), (0, 0)))   # zero pad; stats masked
    m_total = B * N                                        # true BN row count

    # --- weights to bf16 for the MXU; BN/affine params stay f32 ---
    wbx = params["wbx"].astype(bf16)
    wbc = params["wbc"].astype(bf16)
    wrn = params["wrn"].astype(bf16)
    wrc = params["wrc"].astype(bf16)
    wp = wp.astype(bf16) if use_proj else None

    vmem = pl.BlockSpec(memory_space=pltpu.MemorySpace.VMEM)
    grid = (B, nt)
    par = pltpu.CompilerParams(dimension_semantics=("parallel", "parallel"))
    x_spec = pl.BlockSpec((1, tn, x_dim), lambda b, t: (b, t, 0))
    part_spec = lambda d: pl.BlockSpec((1, 1, d), lambda b, t: (b * nt + t, 0, 0))
    const_spec = lambda *shape: pl.BlockSpec(shape, lambda b, t: (0,) * len(shape))

    # --- prologue: per-batch c-branch biases (includes the Linear biases) ---
    cb1, cb2 = pl.pallas_call(
        _c_branch_kernel,
        out_shape=(jax.ShapeDtypeStruct((B, h_dim), f32),
                   jax.ShapeDtypeStruct((B, o_dim), f32)),
        in_specs=[vmem] * 9,
        out_specs=(vmem, vmem),
    )(c2, params["g1c"], params["b1c"], params["g2c"], params["b2c"],
      wbc, params["bb"], wrc, params["br"])
    cb1 = cb1.reshape(B, 1, h_dim)
    cb2 = cb2.reshape(B, 1, o_dim)
    cb1_spec = pl.BlockSpec((1, 1, h_dim), lambda b, t: (b, 0, 0))
    cb2_spec = pl.BlockSpec((1, 1, o_dim), lambda b, t: (b, 0, 0))

    # --- pass 1: global stats of x -> BN1 fold (scale a1, shift d1) ---
    s_x, q_x = pl.pallas_call(
        _feature_stats_kernel,
        out_shape=(jax.ShapeDtypeStruct((B * nt, 1, x_dim), f32),
                   jax.ShapeDtypeStruct((B * nt, 1, x_dim), f32)),
        grid=grid,
        in_specs=[x_spec],
        out_specs=(part_spec(x_dim), part_spec(x_dim)),
        compiler_params=par,
    )(x)
    mean_x = jnp.sum(s_x, axis=0) / m_total                       # (1, x_dim)
    var_x = jnp.sum(q_x, axis=0) / m_total - mean_x * mean_x
    a1 = params["g1x"] * jax.lax.rsqrt(var_x + EPS)
    d1 = params["b1x"] - mean_x * a1

    # --- pass 2: global stats of net -> BN2 fold (a2, d2) ---
    s_n, q_n = pl.pallas_call(
        functools.partial(_net_stats_kernel, tn=tn,
                          n_valid=None if n_pad == N else N),
        out_shape=(jax.ShapeDtypeStruct((B * nt, 1, h_dim), f32),
                   jax.ShapeDtypeStruct((B * nt, 1, h_dim), f32)),
        grid=grid,
        in_specs=[x_spec,
                  const_spec(1, x_dim),            # a1
                  const_spec(1, x_dim),            # d1
                  const_spec(x_dim, h_dim),        # wbx (bf16, stays resident)
                  cb1_spec],
        out_specs=(part_spec(h_dim), part_spec(h_dim)),
        compiler_params=par,
    )(x, a1, d1, wbx, cb1)
    mean_n = jnp.sum(s_n, axis=0) / m_total                       # (1, h_dim)
    var_n = jnp.sum(q_n, axis=0) / m_total - mean_n * mean_n
    a2 = params["g2n"] * jax.lax.rsqrt(var_n + EPS)
    d2 = params["b2n"] - mean_n * a2

    # --- pass 3: output ---
    in_specs = [x_spec,
                const_spec(1, x_dim), const_spec(1, x_dim),       # a1, d1
                const_spec(x_dim, h_dim),                         # wbx
                cb1_spec,
                const_spec(1, h_dim), const_spec(1, h_dim),       # a2, d2
                const_spec(h_dim, o_dim),                         # wrn
                cb2_spec]
    args = [x, a1, d1, wbx, cb1, a2, d2, wrn, cb2]
    if use_proj:
        in_specs.append(const_spec(x_dim, o_dim))                 # wp
        args.append(wp)
    out = pl.pallas_call(
        functools.partial(_out_kernel, use_proj=use_proj),
        out_shape=jax.ShapeDtypeStruct((B, n_pad, o_dim), f32),
        grid=grid,
        in_specs=in_specs,
        out_specs=pl.BlockSpec((1, tn, o_dim), lambda b, t: (b, t, 0)),
        compiler_params=par,
    )(*args)
    if n_pad != N:
        out = out[:, :N, :]
    return out


# --------------------------------------------------------------------------
# Pure-JAX reference matching the PyTorch forward (training-mode BN).
# --------------------------------------------------------------------------
def reference(x, c, params):
    B, N, x_dim = x.shape
    c_dim = c.shape[-1]
    xf = x.reshape(-1, x_dim).astype(jnp.float32)
    cf = jnp.broadcast_to(c, (B, N, c_dim)).reshape(-1, c_dim).astype(jnp.float32)

    def bn(v, g, b):
        mean = v.mean(axis=0, keepdims=True)
        var = ((v - mean) ** 2).mean(axis=0, keepdims=True)
        return (v - mean) / jnp.sqrt(var + EPS) * g + b

    g1 = jnp.concatenate([params["g1x"], params["g1c"]], axis=-1)
    b1 = jnp.concatenate([params["b1x"], params["b1c"]], axis=-1)
    wb = jnp.concatenate([params["wbx"], params["wbc"]], axis=0)
    g2 = jnp.concatenate([params["g2n"], params["g2c"]], axis=-1)
    b2 = jnp.concatenate([params["b2n"], params["b2c"]], axis=-1)
    wr = jnp.concatenate([params["wrn"], params["wrc"]], axis=0)

    net = jax.nn.relu(bn(jnp.concatenate([xf, cf], -1), g1, b1)) @ wb + params["bb"]
    dx = jax.nn.relu(bn(jnp.concatenate([net, cf], -1), g2, b2)) @ wr + params["br"]
    wp = params.get("wp", None)
    xs = xf if wp is None else xf @ wp
    return (xs + dx).reshape(B, N, dx.shape[-1])


def make_params(key, x_dim, c_dim, h_dim, o_dim):
    keys = jax.random.split(key, 15)

    def rnd(k, shape, scale=0.1):
        return scale * jax.random.normal(k, shape, jnp.float32)

    # NOTE: PyTorch reset_parameters() zero-inits the residual Linear; small
    # non-zero values are used here so the full residual path is exercised.
    params = dict(
        g1x=1.0 + rnd(keys[0], (1, x_dim)), b1x=rnd(keys[1], (1, x_dim)),
        g1c=1.0 + rnd(keys[2], (1, c_dim)), b1c=rnd(keys[3], (1, c_dim)),
        wbx=rnd(keys[4], (x_dim, h_dim)), wbc=rnd(keys[5], (c_dim, h_dim)),
        bb=rnd(keys[6], (1, h_dim)),
        g2n=1.0 + rnd(keys[7], (1, h_dim)), b2n=rnd(keys[8], (1, h_dim)),
        g2c=1.0 + rnd(keys[9], (1, c_dim)), b2c=rnd(keys[10], (1, c_dim)),
        wrn=rnd(keys[11], (h_dim, o_dim)), wrc=rnd(keys[12], (c_dim, o_dim)),
        br=rnd(keys[13], (1, o_dim)),
    )
    if x_dim != o_dim:   # module: nn.Linear(x_dim, o_dim, bias=False) else Identity
        params["wp"] = rnd(keys[14], (x_dim, o_dim))
    return params


if __name__ == "__main__":
    key = jax.random.PRNGKey(0)
    k1, k2, k3, k4, k5, k6 = jax.random.split(key, 6)
    # bf16 MXU dots (per the perf review) vs. an f32 reference -> loose tolerance.
    RTOL = ATOL = 2e-2

    # Config A: projection shortcut (x_dim != o_dim); N divides the tile exactly.
    B, N, x_dim, c_dim, h_dim, o_dim = 2, 64, 32, 16, 48, 64
    params_a = make_params(k1, x_dim, c_dim, h_dim, o_dim)
    x_a = jax.random.normal(k2, (B, N, x_dim), jnp.float32)
    c_a = jax.random.normal(k3, (B, 1, c_dim), jnp.float32)
    out_a = jax.block_until_ready(concat_resnet_block(x_a, c_a, params_a, block_n=32))
    np.testing.assert_allclose(np.asarray(out_a), np.asarray(reference(x_a, c_a, params_a)),
                               rtol=RTOL, atol=ATOL)

    # Config B: identity shortcut (x_dim == o_dim); ragged N exercises padding+masking.
    B, N, x_dim, c_dim, h_dim, o_dim = 2, 50, 32, 16, 32, 32
    params_b = make_params(k4, x_dim, c_dim, h_dim, o_dim)
    x_b = jax.random.normal(k5, (B, N, x_dim), jnp.float32)
    c_b = jax.random.normal(k6, (B, 1, c_dim), jnp.float32)
    out_b = jax.block_until_ready(concat_resnet_block(x_b, c_b, params_b, block_n=32))
    np.testing.assert_allclose(np.asarray(out_b), np.asarray(reference(x_b, c_b, params_b)),
                               rtol=RTOL, atol=ATOL)

    print("KERNEL_OK")
</pallas_src>

<mosaic_0001>
module attributes {stable_mosaic.version = 11 : i64} {
  func.func @_c_branch_kernel(%arg0: memref<2x16xf32, #tpu.memory_space<vmem>>, %arg1: memref<1x16xf32, #tpu.memory_space<vmem>>, %arg2: memref<1x16xf32, #tpu.memory_space<vmem>>, %arg3: memref<1x16xf32, #tpu.memory_space<vmem>>, %arg4: memref<1x16xf32, #tpu.memory_space<vmem>>, %arg5: memref<16x48xbf16, #tpu.memory_space<vmem>>, %arg6: memref<1x48xf32, #tpu.memory_space<vmem>>, %arg7: memref<16x64xbf16, #tpu.memory_space<vmem>>, %arg8: memref<1x64xf32, #tpu.memory_space<vmem>>, %arg9: memref<2x48xf32, #tpu.memory_space<vmem>>, %arg10: memref<2x64xf32, #tpu.memory_space<vmem>>) attributes {dimension_semantics = [], scalar_prefetch = 0 : i64, scratch_operands = 0 : i64, tpu.core_type = #tpu.core_type<tc>} {
    %c0 = arith.constant 0 : index
    %c0_0 = arith.constant 0 : index
    %0 = vector.load %arg0[%c0, %c0_0] : memref<2x16xf32, #tpu.memory_space<vmem>>, vector<2x16xf32>
    %cst = arith.constant dense<0.000000e+00> : vector<16xf32>
    %1 = vector.multi_reduction <add>, %0, %cst [0] : vector<2x16xf32> to vector<16xf32>
    %2 = vector.shape_cast %1 : vector<16xf32> to vector<1x16xf32>
    %cst_1 = arith.constant 2.000000e+00 : f32
    %3 = vector.broadcast %cst_1 : f32 to vector<1x16xf32>
    %4 = arith.divf %2, %3 : vector<1x16xf32>
    %5 = vector.broadcast %4 : vector<1x16xf32> to vector<2x16xf32>
    %6 = arith.subf %0, %5 : vector<2x16xf32>
    %7 = arith.mulf %6, %6 : vector<2x16xf32>
    %cst_2 = arith.constant dense<0.000000e+00> : vector<16xf32>
    %8 = vector.multi_reduction <add>, %7, %cst_2 [0] : vector<2x16xf32> to vector<16xf32>
    %9 = vector.shape_cast %8 : vector<16xf32> to vector<1x16xf32>
    %cst_3 = arith.constant 2.000000e+00 : f32
    %10 = vector.broadcast %cst_3 : f32 to vector<1x16xf32>
    %11 = arith.divf %9, %10 : vector<1x16xf32>
    %12 = vector.broadcast %4 : vector<1x16xf32> to vector<2x16xf32>
    %13 = arith.subf %0, %12 : vector<2x16xf32>
    %cst_4 = arith.constant 9.99999974E-6 : f32
    %14 = vector.broadcast %cst_4 : f32 to vector<1x16xf32>
    %15 = arith.addf %11, %14 : vector<1x16xf32>
    %16 = math.rsqrt %15 : vector<1x16xf32>
    %17 = vector.broadcast %16 : vector<1x16xf32> to vector<2x16xf32>
    %18 = arith.mulf %13, %17 : vector<2x16xf32>
    %c0_5 = arith.constant 0 : index
    %c0_6 = arith.constant 0 : index
    %19 = vector.load %arg1[%c0_5, %c0_6] : memref<1x16xf32, #tpu.memory_space<vmem>>, vector<1x16xf32>
    %20 = vector.broadcast %19 : vector<1x16xf32> to vector<2x16xf32>
    %21 = arith.mulf %18, %20 : vector<2x16xf32>
    %c0_7 = arith.constant 0 : index
    %c0_8 = arith.constant 0 : index
    %22 = vector.load %arg2[%c0_7, %c0_8] : memref<1x16xf32, #tpu.memory_space<vmem>>, vector<1x16xf32>
    %23 = vector.broadcast %22 : vector<1x16xf32> to vector<2x16xf32>
    %24 = arith.addf %21, %23 : vector<2x16xf32>
    %cst_9 = arith.constant 0.000000e+00 : f32
    %25 = vector.broadcast %cst_9 : f32 to vector<2x16xf32>
    %26 = arith.maximumf %24, %25 : vector<2x16xf32>
    %27 = arith.truncf %26 : vector<2x16xf32> to vector<2x16xbf16>
    %c0_10 = arith.constant 0 : index
    %c0_11 = arith.constant 0 : index
    %28 = vector.load %arg3[%c0_10, %c0_11] : memref<1x16xf32, #tpu.memory_space<vmem>>, vector<1x16xf32>
    %29 = vector.broadcast %28 : vector<1x16xf32> to vector<2x16xf32>
    %30 = arith.mulf %18, %29 : vector<2x16xf32>
    %c0_12 = arith.constant 0 : index
    %c0_13 = arith.constant 0 : index
    %31 = vector.load %arg4[%c0_12, %c0_13] : memref<1x16xf32, #tpu.memory_space<vmem>>, vector<1x16xf32>
    %32 = vector.broadcast %31 : vector<1x16xf32> to vector<2x16xf32>
    %33 = arith.addf %30, %32 : vector<2x16xf32>
    %cst_14 = arith.constant 0.000000e+00 : f32
    %34 = vector.broadcast %cst_14 : f32 to vector<2x16xf32>
    %35 = arith.maximumf %33, %34 : vector<2x16xf32>
    %36 = arith.truncf %35 : vector<2x16xf32> to vector<2x16xbf16>
    %c0_15 = arith.constant 0 : index
    %c0_16 = arith.constant 0 : index
    %37 = vector.load %arg5[%c0_15, %c0_16] : memref<16x48xbf16, #tpu.memory_space<vmem>>, vector<16x48xbf16>
    %cst_17 = arith.constant dense<0.000000e+00> : vector<2x48xf32>
    %38 = tpu.matmul %27, %37, %cst_17 {dimension_numbers = #tpu.dot_dimension_numbers<[1], [0], [0], [1], [0, 0, 1, 1], [], []>} : vector<2x16xbf16>, vector<16x48xbf16>, vector<2x48xf32> -> vector<2x48xf32>
    %c0_18 = arith.constant 0 : index
    %c0_19 = arith.constant 0 : index
    %39 = vector.load %arg6[%c0_18, %c0_19] : memref<1x48xf32, #tpu.memory_space<vmem>>, vector<1x48xf32>
    %40 = vector.broadcast %39 : vector<1x48xf32> to vector<2x48xf32>
    %41 = arith.addf %38, %40 : vector<2x48xf32>
    %c0_20 = arith.constant 0 : index
    %c0_21 = arith.constant 0 : index
    %42 = vector.load %arg9[%c0_20, %c0_21] : memref<2x48xf32, #tpu.memory_space<vmem>>, vector<2x48xf32>
    tpu.vector_store %arg9[%c0_20, %c0_21], %41 {strides = array<i32>} : memref<2x48xf32, #tpu.memory_space<vmem>>, vector<2x48xf32>,
    %c0_22 = arith.constant 0 : index
    %c0_23 = arith.constant 0 : index
    %43 = vector.load %arg7[%c0_22, %c0_23] : memref<16x64xbf16, #tpu.memory_space<vmem>>, vector<16x64xbf16>
    %cst_24 = arith.constant dense<0.000000e+00> : vector<2x64xf32>
    %44 = tpu.matmul %36, %43, %cst_24 {dimension_numbers = #tpu.dot_dimension_numbers<[1], [0], [0], [1], [0, 0, 1, 1], [], []>} : vector<2x16xbf16>, vector<16x64xbf16>, vector<2x64xf32> -> vector<2x64xf32>
    %c0_25 = arith.constant 0 : index
    %c0_26 = arith.constant 0 : index
    %45 = vector.load %arg8[%c0_25, %c0_26] : memref<1x64xf32, #tpu.memory_space<vmem>>, vector<1x64xf32>
    %46 = vector.broadcast %45 : vector<1x64xf32> to vector<2x64xf32>
    %47 = arith.addf %44, %46 : vector<2x64xf32>
    %c0_27 = arith.constant 0 : index
    %c0_28 = arith.constant 0 : index
    %48 = vector.load %arg10[%c0_27, %c0_28] : memref<2x64xf32, #tpu.memory_space<vmem>>, vector<2x64xf32>
    tpu.vector_store %arg10[%c0_27, %c0_28], %47 {strides = array<i32>} : memref<2x64xf32, #tpu.memory_space<vmem>>, vector<2x64xf32>,
    return
  }
}

module attributes {stable_mosaic.version = 11 : i64} {
  func.func @_feature_stats_kernel(%arg0: i32, %arg1: i32, %arg2: memref<1x32x32xf32, #tpu.memory_space<vmem>>, %arg3: memref<1x1x32xf32, #tpu.memory_space<vmem>>, %arg4: memref<1x1x32xf32, #tpu.memory_space<vmem>>) attributes {dimension_semantics = [#tpu.dimension_semantics<parallel>, #tpu.dimension_semantics<parallel>], iteration_bounds = array<i64: 2, 2>, scalar_prefetch = 0 : i64, scratch_operands = 0 : i64, tpu.core_type = #tpu.core_type<tc>, window_params = [{transform_indices = @transform_0, window_bounds = array<i64: 1, 32, 32>}, {transform_indices = @transform_1, window_bounds = array<i64: 1, 1, 32>}, {transform_indices = @transform_2, window_bounds = array<i64: 1, 1, 32>}]} {
    %c0 = arith.constant 0 : index
    %c0_0 = arith.constant 0 : index
    %c0_1 = arith.constant 0 : index
    %0 = vector.load %arg2[%c0, %c0_0, %c0_1] : memref<1x32x32xf32, #tpu.memory_space<vmem>>, vector<1x32x32xf32>
    %1 = vector.shape_cast %0 : vector<1x32x32xf32> to vector<32x32xf32>
    %cst = arith.constant dense<0.000000e+00> : vector<32xf32>
    %2 = vector.multi_reduction <add>, %1, %cst [0] : vector<32x32xf32> to vector<32xf32>
    %3 = vector.shape_cast %2 : vector<32xf32> to vector<1x32xf32>
    %c0_2 = arith.constant 0 : index
    %c0_3 = arith.constant 0 : index
    %c0_4 = arith.constant 0 : index
    %4 = vector.load %arg3[%c0_2, %c0_3, %c0_4] : memref<1x1x32xf32, #tpu.memory_space<vmem>>, vector<1x1x32xf32>
    %5 = vector.shape_cast %4 : vector<1x1x32xf32> to vector<1x32xf32>
    %6 = vector.shape_cast %3 : vector<1x32xf32> to vector<1x1x32xf32>
    tpu.vector_store %arg3[%c0_2, %c0_3, %c0_4], %6 {strides = array<i32>} : memref<1x1x32xf32, #tpu.memory_space<vmem>>, vector<1x1x32xf32>,
    %7 = arith.mulf %1, %1 : vector<32x32xf32>
    %cst_5 = arith.constant dense<0.000000e+00> : vector<32xf32>
    %8 = vector.multi_reduction <add>, %7, %cst_5 [0] : vector<32x32xf32> to vector<32xf32>
    %9 = vector.shape_cast %8 : vector<32xf32> to vector<1x32xf32>
    %c0_6 = arith.constant 0 : index
    %c0_7 = arith.constant 0 : index
    %c0_8 = arith.constant 0 : index
    %10 = vector.load %arg4[%c0_6, %c0_7, %c0_8] : memref<1x1x32xf32, #tpu.memory_space<vmem>>, vector<1x1x32xf32>
    %11 = vector.shape_cast %10 : vector<1x1x32xf32> to vector<1x32xf32>
    %12 = vector.shape_cast %9 : vector<1x32xf32> to vector<1x1x32xf32>
    tpu.vector_store %arg4[%c0_6, %c0_7, %c0_8], %12 {strides = array<i32>} : memref<1x1x32xf32, #tpu.memory_space<vmem>>, vector<1x1x32xf32>,
    return
  }
  func.func @transform_0(%arg0: i32, %arg1: i32) -> (i32, i32, i32) {
    %c0_i32 = arith.constant 0 : i32
    %c0_i32_0 = arith.constant 0 : i32
    return %arg0, %arg1, %c0_i32 : i32, i32, i32
  }
  func.func @transform_1(%arg0: i32, %arg1: i32) -> (i32, i32, i32) {
    %c2_i32 = arith.constant 2 : i32
    %0 = arith.muli %arg0, %c2_i32 : i32
    %1 = arith.addi %0, %arg1 : i32
    %c0_i32 = arith.constant 0 : i32
    %c0_i32_0 = arith.constant 0 : i32
    %c0_i32_1 = arith.constant 0 : i32
    return %1, %c0_i32, %c0_i32_0 : i32, i32, i32
  }
  func.func @transform_2(%arg0: i32, %arg1: i32) -> (i32, i32, i32) {
    %c2_i32 = arith.constant 2 : i32
    %0 = arith.muli %arg0, %c2_i32 : i32
    %1 = arith.addi %0, %arg1 : i32
    %c0_i32 = arith.constant 0 : i32
    %c0_i32_0 = arith.constant 0 : i32
    %c0_i32_1 = arith.constant 0 : i32
    return %1, %c0_i32, %c0_i32_0 : i32, i32, i32
  }
}

module attributes {stable_mosaic.version = 11 : i64} {
  func.func @_net_stats_kernel(%arg0: i32, %arg1: i32, %arg2: memref<1x32x32xf32, #tpu.memory_space<vmem>>, %arg3: memref<1x32xf32, #tpu.memory_space<vmem>>, %arg4: memref<1x32xf32, #tpu.memory_space<vmem>>, %arg5: memref<32x48xbf16, #tpu.memory_space<vmem>>, %arg6: memref<1x1x48xf32, #tpu.memory_space<vmem>>, %arg7: memref<1x1x48xf32, #tpu.memory_space<vmem>>, %arg8: memref<1x1x48xf32, #tpu.memory_space<vmem>>) attributes {dimension_semantics = [#tpu.dimension_semantics<parallel>, #tpu.dimension_semantics<parallel>], iteration_bounds = array<i64: 2, 2>, scalar_prefetch = 0 : i64, scratch_operands = 0 : i64, tpu.core_type = #tpu.core_type<tc>, window_params = [{transform_indices = @transform_0, window_bounds = array<i64: 1, 32, 32>}, {pipeline_mode = #tpu.pipeline_mode<synchronous>, transform_indices = @transform_1, window_bounds = array<i64: 1, 32>}, {pipeline_mode = #tpu.pipeline_mode<synchronous>, transform_indices = @transform_2, window_bounds = array<i64: 1, 32>}, {pipeline_mode = #tpu.pipeline_mode<synchronous>, transform_indices = @transform_3, window_bounds = array<i64: 32, 48>}, {transform_indices = @transform_4, window_bounds = array<i64: 1, 1, 48>}, {transform_indices = @transform_5, window_bounds = array<i64: 1, 1, 48>}, {transform_indices = @transform_6, window_bounds = array<i64: 1, 1, 48>}]} {
    %c0 = arith.constant 0 : index
    %c0_0 = arith.constant 0 : index
    %c0_1 = arith.constant 0 : index
    %0 = vector.load %arg2[%c0, %c0_0, %c0_1] : memref<1x32x32xf32, #tpu.memory_space<vmem>>, vector<1x32x32xf32>
    %1 = vector.shape_cast %0 : vector<1x32x32xf32> to vector<32x32xf32>
    %c0_2 = arith.constant 0 : index
    %c0_3 = arith.constant 0 : index
    %2 = vector.load %arg3[%c0_2, %c0_3] : memref<1x32xf32, #tpu.memory_space<vmem>>, vector<1x32xf32>
    %3 = vector.broadcast %2 : vector<1x32xf32> to vector<32x32xf32>
    %4 = arith.mulf %1, %3 : vector<32x32xf32>
    %c0_4 = arith.constant 0 : index
    %c0_5 = arith.constant 0 : index
    %5 = vector.load %arg4[%c0_4, %c0_5] : memref<1x32xf32, #tpu.memory_space<vmem>>, vector<1x32xf32>
    %6 = vector.broadcast %5 : vector<1x32xf32> to vector<32x32xf32>
    %7 = arith.addf %4, %6 : vector<32x32xf32>
    %cst = arith.constant 0.000000e+00 : f32
    %8 = vector.broadcast %cst : f32 to vector<32x32xf32>
    %9 = arith.maximumf %7, %8 : vector<32x32xf32>
    %10 = arith.truncf %9 : vector<32x32xf32> to vector<32x32xbf16>
    %c0_6 = arith.constant 0 : index
    %c0_7 = arith.constant 0 : index
    %11 = vector.load %arg5[%c0_6, %c0_7] : memref<32x48xbf16, #tpu.memory_space<vmem>>, vector<32x48xbf16>
    %cst_8 = arith.constant dense<0.000000e+00> : vector<32x48xf32>
    %12 = tpu.matmul %10, %11, %cst_8 {dimension_numbers = #tpu.dot_dimension_numbers<[1], [0], [0], [1], [0, 0, 1, 1], [], []>} : vector<32x32xbf16>, vector<32x48xbf16>, vector<32x48xf32> -> vector<32x48xf32>
    %c0_9 = arith.constant 0 : index
    %c0_10 = arith.constant 0 : index
    %c0_11 = arith.constant 0 : index
    %13 = vector.load %arg6[%c0_9, %c0_10, %c0_11] : memref<1x1x48xf32, #tpu.memory_space<vmem>>, vector<1x1x48xf32>
    %14 = vector.shape_cast %13 : vector<1x1x48xf32> to vector<1x48xf32>
    %15 = vector.broadcast %14 : vector<1x48xf32> to vector<32x48xf32>
    %16 = arith.addf %12, %15 : vector<32x48xf32>
    %cst_12 = arith.constant dense<0.000000e+00> : vector<48xf32>
    %17 = vector.multi_reduction <add>, %16, %cst_12 [0] : vector<32x48xf32> to vector<48xf32>
    %18 = vector.shape_cast %17 : vector<48xf32> to vector<1x48xf32>
    %c0_13 = arith.constant 0 : index
    %c0_14 = arith.constant 0 : index
    %c0_15 = arith.constant 0 : index
    %19 = vector.load %arg7[%c0_13, %c0_14, %c0_15] : memref<1x1x48xf32, #tpu.memory_space<vmem>>, vector<1x1x48xf32>
    %20 = vector.shape_cast %19 : vector<1x1x48xf32> to vector<1x48xf32>
    %21 = vector.shape_cast %18 : vector<1x48xf32> to vector<1x1x48xf32>
    tpu.vector_store %arg7[%c0_13, %c0_14, %c0_15], %21 {strides = array<i32>} : memref<1x1x48xf32, #tpu.memory_space<vmem>>, vector<1x1x48xf32>,
    %22 = arith.mulf %16, %16 : vector<32x48xf32>
    %cst_16 = arith.constant dense<0.000000e+00> : vector<48xf32>
    %23 = vector.multi_reduction <add>, %22, %cst_16 [0] : vector<32x48xf32> to vector<48xf32>
    %24 = vector.shape_cast %23 : vector<48xf32> to vector<1x48xf32>
    %c0_17 = arith.constant 0 : index
    %c0_18 = arith.constant 0 : index
    %c0_19 = arith.constant 0 : index
    %25 = vector.load %arg8[%c0_17, %c0_18, %c0_19] : memref<1x1x48xf32, #tpu.memory_space<vmem>>, vector<1x1x48xf32>
    %26 = vector.shape_cast %25 : vector<1x1x48xf32> to vector<1x48xf32>
    %27 = vector.shape_cast %24 : vector<1x48xf32> to vector<1x1x48xf32>
    tpu.vector_store %arg8[%c0_17, %c0_18, %c0_19], %27 {strides = array<i32>} : memref<1x1x48xf32, #tpu.memory_space<vmem>>, vector<1x1x48xf32>,
    return
  }
  func.func @transform_0(%arg0: i32, %arg1: i32) -> (i32, i32, i32) {
    %c0_i32 = arith.constant 0 : i32
    %c0_i32_0 = arith.constant 0 : i32
    return %arg0, %arg1, %c0_i32 : i32, i32, i32
  }
  func.func @transform_1(%arg0: i32, %arg1: i32) -> (i32, i32) {
    %c0_i32 = arith.constant 0 : i32
    %c0_i32_0 = arith.constant 0 : i32
    %c0_i32_1 = arith.constant 0 : i32
    return %c0_i32, %c0_i32_0 : i32, i32
  }
  func.func @transform_2(%arg0: i32, %arg1: i32) -> (i32, i32) {
    %c0_i32 = arith.constant 0 : i32
    %c0_i32_0 = arith.constant 0 : i32
    %c0_i32_1 = arith.constant 0 : i32
    return %c0_i32, %c0_i32_0 : i32, i32
  }
  func.func @transform_3(%arg0: i32, %arg1: i32) -> (i32, i32) {
    %c0_i32 = arith.constant 0 : i32
    %c0_i32_0 = arith.constant 0 : i32
    %c0_i32_1 = arith.constant 0 : i32
    return %c0_i32, %c0_i32_0 : i32, i32
  }
  func.func @transform_4(%arg0: i32, %arg1: i32) -> (i32, i32, i32) {
    %c0_i32 = arith.constant 0 : i32
    %c0_i32_0 = arith.constant 0 : i32
    %c0_i32_1 = arith.constant 0 : i32
    return %arg0, %c0_i32, %c0_i32_0 : i32, i32, i32
  }
  func.func @transform_5(%arg0: i32, %arg1: i32) -> (i32, i32, i32) {
    %c2_i32 = arith.constant 2 : i32
    %0 = arith.muli %arg0, %c2_i32 : i32
    %1 = arith.addi %0, %arg1 : i32
    %c0_i32 = arith.constant 0 : i32
    %c0_i32_0 = arith.constant 0 : i32
    %c0_i32_1 = arith.constant 0 : i32
    return %1, %c0_i32, %c0_i32_0 : i32, i32, i32
  }
  func.func @transform_6(%arg0: i32, %arg1: i32) -> (i32, i32, i32) {
    %c2_i32 = arith.constant 2 : i32
    %0 = arith.muli %arg0, %c2_i32 : i32
    %1 = arith.addi %0, %arg1 : i32
    %c0_i32 = arith.constant 0 : i32
    %c0_i32_0 = arith.constant 0 : i32
    %c0_i32_1 = arith.constant 0 : i32
    return %1, %c0_i32, %c0_i32_0 : i32, i32, i32
  }
}

module attributes {stable_mosaic.version = 11 : i64} {
  func.func @_out_kernel(%arg0: i32, %arg1: i32, %arg2: memref<1x32x32xf32, #tpu.memory_space<vmem>>, %arg3: memref<1x32xf32, #tpu.memory_space<vmem>>, %arg4: memref<1x32xf32, #tpu.memory_space<vmem>>, %arg5: memref<32x48xbf16, #tpu.memory_space<vmem>>, %arg6: memref<1x1x48xf32, #tpu.memory_space<vmem>>, %arg7: memref<1x48xf32, #tpu.memory_space<vmem>>, %arg8: memref<1x48xf32, #tpu.memory_space<vmem>>, %arg9: memref<48x64xbf16, #tpu.memory_space<vmem>>, %arg10: memref<1x1x64xf32, #tpu.memory_space<vmem>>, %arg11: memref<32x64xbf16, #tpu.memory_space<vmem>>, %arg12: memref<1x32x64xf32, #tpu.memory_space<vmem>>) attributes {dimension_semantics = [#tpu.dimension_semantics<parallel>, #tpu.dimension_semantics<parallel>], iteration_bounds = array<i64: 2, 2>, scalar_prefetch = 0 : i64, scratch_operands = 0 : i64, tpu.core_type = #tpu.core_type<tc>, window_params = [{transform_indices = @transform_0, window_bounds = array<i64: 1, 32, 32>}, {pipeline_mode = #tpu.pipeline_mode<synchronous>, transform_indices = @transform_1, window_bounds = array<i64: 1, 32>}, {pipeline_mode = #tpu.pipeline_mode<synchronous>, transform_indices = @transform_2, window_bounds = array<i64: 1, 32>}, {pipeline_mode = #tpu.pipeline_mode<synchronous>, transform_indices = @transform_3, window_bounds = array<i64: 32, 48>}, {transform_indices = @transform_4, window_bounds = array<i64: 1, 1, 48>}, {pipeline_mode = #tpu.pipeline_mode<synchronous>, transform_indices = @transform_5, window_bounds = array<i64: 1, 48>}, {pipeline_mode = #tpu.pipeline_mode<synchronous>, transform_indices = @transform_6, window_bounds = array<i64: 1, 48>}, {pipeline_mode = #tpu.pipeline_mode<synchronous>, transform_indices = @transform_7, window_bounds = array<i64: 48, 64>}, {transform_indices = @transform_8, window_bounds = array<i64: 1, 1, 64>}, {pipeline_mode = #tpu.pipeline_mode<synchronous>, transform_indices = @transform_9, window_bounds = array<i64: 32, 64>}, {transform_indices = @transform_10, window_bounds = array<i64: 1, 32, 64>}]} {
    %c0 = arith.constant 0 : index
    %c0_0 = arith.constant 0 : index
    %c0_1 = arith.constant 0 : index
    %0 = vector.load %arg2[%c0, %c0_0, %c0_1] : memref<1x32x32xf32, #tpu.memory_space<vmem>>, vector<1x32x32xf32>
    %1 = vector.shape_cast %0 : vector<1x32x32xf32> to vector<32x32xf32>
    %c0_2 = arith.constant 0 : index
    %c0_3 = arith.constant 0 : index
    %2 = vector.load %arg3[%c0_2, %c0_3] : memref<1x32xf32, #tpu.memory_space<vmem>>, vector<1x32xf32>
    %3 = vector.broadcast %2 : vector<1x32xf32> to vector<32x32xf32>
    %4 = arith.mulf %1, %3 : vector<32x32xf32>
    %c0_4 = arith.constant 0 : index
    %c0_5 = arith.constant 0 : index
    %5 = vector.load %arg4[%c0_4, %c0_5] : memref<1x32xf32, #tpu.memory_space<vmem>>, vector<1x32xf32>
    %6 = vector.broadcast %5 : vector<1x32xf32> to vector<32x32xf32>
    %7 = arith.addf %4, %6 : vector<32x32xf32>
    %cst = arith.constant 0.000000e+00 : f32
    %8 = vector.broadcast %cst : f32 to vector<32x32xf32>
    %9 = arith.maximumf %7, %8 : vector<32x32xf32>
    %10 = arith.truncf %9 : vector<32x32xf32> to vector<32x32xbf16>
    %c0_6 = arith.constant 0 : index
    %c0_7 = arith.constant 0 : index
    %11 = vector.load %arg5[%c0_6, %c0_7] : memref<32x48xbf16, #tpu.memory_space<vmem>>, vector<32x48xbf16>
    %cst_8 = arith.constant dense<0.000000e+00> : vector<32x48xf32>
    %12 = tpu.matmul %10, %11, %cst_8 {dimension_numbers = #tpu.dot_dimension_numbers<[1], [0], [0], [1], [0, 0, 1, 1], [], []>} : vector<32x32xbf16>, vector<32x48xbf16>, vector<32x48xf32> -> vector<32x48xf32>
    %c0_9 = arith.constant 0 : index
    %c0_10 = arith.constant 0 : index
    %c0_11 = arith.constant 0 : index
    %13 = vector.load %arg6[%c0_9, %c0_10, %c0_11] : memref<1x1x48xf32, #tpu.memory_space<vmem>>, vector<1x1x48xf32>
    %14 = vector.shape_cast %13 : vector<1x1x48xf32> to vector<1x48xf32>
    %15 = vector.broadcast %14 : vector<1x48xf32> to vector<32x48xf32>
    %16 = arith.addf %12, %15 : vector<32x48xf32>
    %c0_12 = arith.constant 0 : index
    %c0_13 = arith.constant 0 : index
    %17 = vector.load %arg7[%c0_12, %c0_13] : memref<1x48xf32, #tpu.memory_space<vmem>>, vector<1x48xf32>
    %18 = vector.broadcast %17 : vector<1x48xf32> to vector<32x48xf32>
    %19 = arith.mulf %16, %18 : vector<32x48xf32>
    %c0_14 = arith.constant 0 : index
    %c0_15 = arith.constant 0 : index
    %20 = vector.load %arg8[%c0_14, %c0_15] : memref<1x48xf32, #tpu.memory_space<vmem>>, vector<1x48xf32>
    %21 = vector.broadcast %20 : vector<1x48xf32> to vector<32x48xf32>
    %22 = arith.addf %19, %21 : vector<32x48xf32>
    %cst_16 = arith.constant 0.000000e+00 : f32
    %23 = vector.broadcast %cst_16 : f32 to vector<32x48xf32>
    %24 = arith.maximumf %22, %23 : vector<32x48xf32>
    %25 = arith.truncf %24 : vector<32x48xf32> to vector<32x48xbf16>
    %c0_17 = arith.constant 0 : index
    %c0_18 = arith.constant 0 : index
    %26 = vector.load %arg9[%c0_17, %c0_18] : memref<48x64xbf16, #tpu.memory_space<vmem>>, vector<48x64xbf16>
    %cst_19 = arith.constant dense<0.000000e+00> : vector<32x64xf32>
    %27 = tpu.matmul %25, %26, %cst_19 {dimension_numbers = #tpu.dot_dimension_numbers<[1], [0], [0], [1], [0, 0, 1, 1], [], []>} : vector<32x48xbf16>, vector<48x64xbf16>, vector<32x64xf32> -> vector<32x64xf32>
    %c0_20 = arith.constant 0 : index
    %c0_21 = arith.constant 0 : index
    %c0_22 = arith.constant 0 : index
    %28 = vector.load %arg10[%c0_20, %c0_21, %c0_22] : memref<1x1x64xf32, #tpu.memory_space<vmem>>, vector<1x1x64xf32>
    %29 = vector.shape_cast %28 : vector<1x1x64xf32> to vector<1x64xf32>
    %30 = vector.broadcast %29 : vector<1x64xf32> to vector<32x64xf32>
    %31 = arith.addf %27, %30 : vector<32x64xf32>
    %32 = arith.truncf %1 : vector<32x32xf32> to vector<32x32xbf16>
    %c0_23 = arith.constant 0 : index
    %c0_24 = arith.constant 0 : index
    %33 = vector.load %arg11[%c0_23, %c0_24] : memref<32x64xbf16, #tpu.memory_space<vmem>>, vector<32x64xbf16>
    %cst_25 = arith.constant dense<0.000000e+00> : vector<32x64xf32>
    %34 = tpu.matmul %32, %33, %cst_25 {dimension_numbers = #tpu.dot_dimension_numbers<[1], [0], [0], [1], [0, 0, 1, 1], [], []>} : vector<32x32xbf16>, vector<32x64xbf16>, vector<32x64xf32> -> vector<32x64xf32>
    %35 = arith.addf %34, %31 : vector<32x64xf32>
    %c0_26 = arith.constant 0 : index
    %c0_27 = arith.constant 0 : index
    %c0_28 = arith.constant 0 : index
    %36 = vector.load %arg12[%c0_26, %c0_27, %c0_28] : memref<1x32x64xf32, #tpu.memory_space<vmem>>, vector<1x32x64xf32>
    %37 = vector.shape_cast %36 : vector<1x32x64xf32> to vector<32x64xf32>
    %38 = vector.shape_cast %35 : vector<32x64xf32> to vector<1x32x64xf32>
    tpu.vector_store %arg12[%c0_26, %c0_27, %c0_28], %38 {strides = array<i32>} : memref<1x32x64xf32, #tpu.memory_space<vmem>>, vector<1x32x64xf32>,
    return
  }
  func.func @transform_0(%arg0: i32, %arg1: i32) -> (i32, i32, i32) {
    %c0_i32 = arith.constant 0 : i32
    %c0_i32_0 = arith.constant 0 : i32
    return %arg0, %arg1, %c0_i32 : i32, i32, i32
  }
  func.func @transform_1(%arg0: i32, %arg1: i32) -> (i32, i32) {
    %c0_i32 = arith.constant 0 : i32
    %c0_i32_0 = arith.constant 0 : i32
    %c0_i32_1 = arith.constant 0 : i32
    return %c0_i32, %c0_i32_0 : i32, i32
  }
  func.func @transform_2(%arg0: i32, %arg1: i32) -> (i32, i32) {
    %c0_i32 = arith.constant 0 : i32
    %c0_i32_0 = arith.constant 0 : i32
    %c0_i32_1 = arith.constant 0 : i32
    return %c0_i32, %c0_i32_0 : i32, i32
  }
  func.func @transform_3(%arg0: i32, %arg1: i32) -> (i32, i32) {
    %c0_i32 = arith.constant 0 : i32
    %c0_i32_0 = arith.constant 0 : i32
    %c0_i32_1 = arith.constant 0 : i32
    return %c0_i32, %c0_i32_0 : i32, i32
  }
  func.func @transform_4(%arg0: i32, %arg1: i32) -> (i32, i32, i32) {
    %c0_i32 = arith.constant 0 : i32
    %c0_i32_0 = arith.constant 0 : i32
    %c0_i32_1 = arith.constant 0 : i32
    return %arg0, %c0_i32, %c0_i32_0 : i32, i32, i32
  }
  func.func @transform_5(%arg0: i32, %arg1: i32) -> (i32, i32) {
    %c0_i32 = arith.constant 0 : i32
    %c0_i32_0 = arith.constant 0 : i32
    %c0_i32_1 = arith.constant 0 : i32
    return %c0_i32, %c0_i32_0 : i32, i32
  }
  func.func @transform_6(%arg0: i32, %arg1: i32) -> (i32, i32) {
    %c0_i32 = arith.constant 0 : i32
    %c0_i32_0 = arith.constant 0 : i32
    %c0_i32_1 = arith.constant 0 : i32
    return %c0_i32, %c0_i32_0 : i32, i32
  }
  func.func @transform_7(%arg0: i32, %arg1: i32) -> (i32, i32) {
    %c0_i32 = arith.constant 0 : i32
    %c0_i32_0 = arith.constant 0 : i32
    %c0_i32_1 = arith.constant 0 : i32
    return %c0_i32, %c0_i32_0 : i32, i32
  }
  func.func @transform_8(%arg0: i32, %arg1: i32) -> (i32, i32, i32) {
    %c0_i32 = arith.constant 0 : i32
    %c0_i32_0 = arith.constant 0 : i32
    %c0_i32_1 = arith.constant 0 : i32
    return %arg0, %c0_i32, %c0_i32_0 : i32, i32, i32
  }
  func.func @transform_9(%arg0: i32, %arg1: i32) -> (i32, i32) {
    %c0_i32 = arith.constant 0 : i32
    %c0_i32_0 = arith.constant 0 : i32
    %c0_i32_1 = arith.constant 0 : i32
    return %c0_i32, %c0_i32_0 : i32, i32
  }
  func.func @transform_10(%arg0: i32, %arg1: i32) -> (i32, i32, i32) {
    %c0_i32 = arith.constant 0 : i32
    %c0_i32_0 = arith.constant 0 : i32
    return %arg0, %arg1, %c0_i32 : i32, i32, i32
  }
}

</mosaic_0001>

<bundles_post_ra>
// kernel: concat_resnet_block.5
= control target key start
LH: loop header
LB: loop body
LE: loop exit
PB: predicated region body
PF: predicated region fallthrough
CT: control target
= control target key end

     0   :  { %s448_s9 = smov 0   ;;  %s450_s10 = smov 0   ;;  %s519_s0 = inlined_call_operand.vmem [shape: f32[2,64,32], index: 0, kind: input, shape index: {}]   ;;  %s520_s1 = inlined_call_operand.vmem [shape: f32[4,1,32], index: 1, kind: output, shape index: {0}]   ;;  %s521_s2 = inlined_call_operand.vmem [shape: f32[4,1,32], index: 2, kind: output, shape index: {1}]  }
   0x1   :  { %s452_s11 = smov 0   ;;  %s454_s12 = smov 0  }
   0x2   :  { %s456_s13 = smov 0  }
   0x3 LB: > { %s22_s14 = sadd.s32 1, %s423_s11  ;;  %s25_s15 = sadd.s32 1, %s427_s12  ;;  %s431_s13 = sphi %s456_s13, %s13_s13   ;;  %s427_s12 = sphi %s454_s12, %s525_s12   ;;  %s423_s11 = sphi %s452_s11, %s524_s11   ;;  %s419_s10 = sphi %s450_s10, %s523_s10   ;;  %s415_s9 = sphi %s448_s9, %s522_s9  }
   0x4   : > { %p23_p0 = scmp.ge.s32.totalorder %s22_s14, 2  ;;  %p345_p1 = scmp.ge.s32.totalorder %s431_s13, 1 }
   0x5   : > { %p142_p2 = scmp.lt.s32.totalorder %s431_s13, 5 }
   0x6   : > { %s527_s14 = smov (%p23_p0, %s22_s14), 0  ;;  %s529_s15 = smov (!%p23_p0, %s25_s15), %s427_s12 }
   0x7   : > { %p143_p3 = pnand %p345_p1, %p142_p2  ;;  %p27_p4 = scmp.ge.s32.totalorder %s529_s15, 2 }
   0x8   : > { %s346_s16 = sshll.u32 (!%p143_p3), %s415_s9, 2  ;;  %p174_p5 = scmp.lt.s32.totalorder (!%p143_p3), %s419_s10, 1 }
   0x9   : > { %s531_s15 = smov (%p27_p4, %s529_s15), 0  ;;  %146 = sbr.rel (%p143_p3) target bundleno = 44 (0x2c), region = 24 }
   0xa   : > { %p176_p6 = scmp.lt.s32.totalorder (!%p143_p3), %s346_s16, 7  ;;  %s349_s24 = sshll.u32 (!%p143_p3), %s419_s10, 1 }
   0xb   : > { %s184_s25 = sadd.s32 (!%p143_p3), %s415_s9, %s349_s24 }
   0xc   : > { %p185_p7 = scmp.lt.s32.totalorder (!%p143_p3), %s184_s25, 3 }
   0xe   : > { %s175_s17 = scalar_select %p174_p5, %s419_s10, 1  ;;  %vm201_vm0 = vcmask 261120   ;;  %vm215_vm1 = vcmask 253952  }
   0xf   : > { %s533_s16 = smov (!%p176_p6, %s346_s16), 7  ;;  %s535_s25 = smov (!%p185_p7, %s184_s25), 3 }
  0x10   : > { %s347_s18 = sshll.u32 %s175_s17, 3  ;;  %s187_s28 = scalar_lea.vmem %s520_s1, %s535_s25 }
  0x11   : > { %s179_s19 = sadd.s32 %s347_s18, %s533_s16  ;;  %s194_s3 = scalar_lea.vmem %s521_s2, %s535_s25 }
  0x12   : > { %s348_s20 = sshll.u32 %s179_s19, 3 }
  0x13   : > { %s181_s23 = scalar_lea.vmem %s519_s0, %s348_s20 }
  0x14   : > { %v197_v0 = vld [vmem:[%s181_s23] sm:$0xff]  ;;  %v198_v1 = vld [vmem:[%s181_s23 + $0x8] sm:$0xff]  ;;  %v199_v2 = vld [vmem:[%s181_s23 + $0x10] sm:$0xff] }
  0x15   : > { %v200_v3 = vld [vmem:[%s181_s23 + $0x18] sm:$0xff]  ;;  %v202_v4 = vsel %vm201_vm0, %v197_v0, 0.0  ;;  %v203_v5 = vsel %vm201_vm0, %v198_v1, 0.0  ;;  %v205_v6 = vsel %vm201_vm0, %v199_v2, 0.0  ;;  %v217_v7 = vmul.f32 %v197_v0, %v197_v0 }
  0x16   : > { %v204_v8 = vadd.f32 %v203_v5, %v202_v4  ;;  %v218_v9 = vmul.f32 %v198_v1, %v198_v1  ;;  %v219_v10 = vmul.f32 %v199_v2, %v199_v2  ;;  %v207_v11 = vsel %vm201_vm0, %v200_v3, 0.0 }
  0x17   : > { %v220_v12 = vmul.f32 %v200_v3, %v200_v3  ;;  %v221_v13 = vsel %vm201_vm0, %v217_v7, 0.0 }
  0x18   : > { %v206_v14 = vadd.f32 %v205_v6, %v204_v8  ;;  %v222_v15 = vsel %vm201_vm0, %v218_v9, 0.0  ;;  %v224_v16 = vsel %vm201_vm0, %v219_v10, 0.0 }
  0x19   : > { %v223_v17 = vadd.f32 %v222_v15, %v221_v13  ;;  %v226_v19 = vsel %vm201_vm0, %v220_v12, 0.0 }
  0x1a   : > { %v208_v18 = vadd.f32 %v207_v11, %v206_v14 }
  0x1b   : > { %v225_v20 = vadd.f32 %v224_v16, %v223_v17 }
  0x1c   : > { %v209_v21 = vrot.slane %v208_v18, 4 }
  0x1d   : > { %v227_v22 = vadd.f32 %v226_v19, %v225_v20 }
  0x1e   : > { %v210_v23 = vadd.f32 %v209_v21, %v208_v18 }
  0x1f   : > { %v228_v24 = vrot.slane %v227_v22, 4 }
  0x20   : > { %v211_v25 = vrot.slane %v210_v23, 2 }
  0x21   : > { %v229_v26 = vadd.f32 %v228_v24, %v227_v22 }
  0x22   : > { %v212_v27 = vadd.f32 %v211_v25, %v210_v23 }
  0x23   : > { %v230_v28 = vrot.slane %v229_v26, 2 }
  0x24   : > { %v213_v29 = vrot.slane %v212_v27, 1 }
  0x25   : > { %v231_v30 = vadd.f32 %v230_v28, %v229_v26 }
  0x26   : > { %v214_v31 = vadd.f32 %v213_v29, %v212_v27 }
  0x27   : > { %v232_v32 = vrot.slane %v231_v30, 1 }
  0x28   : > { %216 = vst.msk [vmem:[%s187_s28] sm:$0x1] %vm215_vm1, %v214_v31 }
  0x29   : > { %v233_v33 = vadd.f32 %v232_v32, %v231_v30 }
  0x2b   : > { %234 = vst.msk [vmem:[%s194_s3] sm:$0x1] %vm215_vm1, %v233_v33 }
  0x2c PF: > { %s13_s13 = sadd.s32 1, %s431_s13   ;;  %s522_s9 = smov %s423_s11 }
  0x2d   : > { %p10_p8 = scmp.ge.s32.totalorder %s13_s13, 6   ;;  %s523_s10 = smov %s427_s12 }
  0x2e   : > { %s524_s11 = smov %s527_s14  ;;  %s525_s12 = smov %s531_s15 }
  0x2f   :  { %12 = sbr.rel (!%p10_p8) target bundleno = 3 (0x3), region = 66 }

// kernel: concat_resnet_block.4
= control target key start
LH: loop header
LB: loop body
LE: loop exit
PB: predicated region body
PF: predicated region fallthrough
CT: control target
= control target key end

     0   :  { %v256_v0 = vmov 0.0   ;;  %vm36_vm0 = vcmask 123904   ;;  %vm257_vm1 = vmmov 0   ;;  %vm110_vm2 = vcmask 130048   ;;  %s348_s5 = inlined_call_operand.vmem [shape: bf16[16,48], index: 5, kind: input, shape index: {}]   ;;  %s349_s7 = inlined_call_operand.vmem [shape: bf16[16,64], index: 7, kind: input, shape index: {}]   ;;  %s350_s0 = inlined_call_operand.vmem [shape: f32[2,16], index: 0, kind: input, shape index: {}]   ;;  %s351_s1 = inlined_call_operand.vmem [shape: f32[1,16], index: 1, kind: input, shape index: {}]   ;;  %s352_s3 = inlined_call_operand.vmem [shape: f32[1,16], index: 3, kind: input, shape index: {}]   ;;  %s353_s2 = inlined_call_operand.vmem [shape: f32[1,16], index: 2, kind: input, shape index: {}]   ;;  %s354_s4 = inlined_call_operand.vmem [shape: f32[1,16], index: 4, kind: input, shape index: {}]   ;;  %s355_s6 = inlined_call_operand.vmem [shape: f32[1,48], index: 6, kind: input, shape index: {}]   ;;  %s356_s8 = inlined_call_operand.vmem [shape: f32[1,64], index: 8, kind: input, shape index: {}]   ;;  %s357_s9 = inlined_call_operand.vmem [shape: f32[2,48], index: 9, kind: output, shape index: {0}]   ;;  %s358_s10 = inlined_call_operand.vmem [shape: f32[2,64], index: 10, kind: output, shape index: {1}]  }
   0x1   :  { %238 = vmatprep.subr.bf16.mxu0 %v256_v0  ;;  %244 = vmatprep.subr.bf16.mxu1 %v256_v0  ;;  %v252_v1 = vld [vmem:[%s348_s5] sm:$0xff]   ;;  %vm154_vm3 = vcmask 386048   ;;  %vm214_vm4 = vcmask 517120  }
   0x2   :  { %v253_v2 = vld [vmem:[%s349_s7] sm:$0xff]   ;;  %240 = vmatprep.mubr.msk.bf16.mxu0 %vm257_vm1, %v256_v0  ;;  %246 = vmatprep.mubr.msk.bf16.mxu1 %vm257_vm1, %v256_v0 }
   0x3   :  { %239 = vmatpush3.bf16.msra.mxu0 %v252_v1  ;;  %v35_v3 = vld [vmem:[%s350_s0] sm:$0x3]  ;;  %245 = vmatpush3.bf16.msra.mxu1 %v253_v2 }
   0x4   :  { %v37_v4 = vsel %vm36_vm0, %v35_v3, 0.0  ;;  %v224_v24 = vld [vmem:[%s351_s1] ss:$0 sm:$0xff] }
   0x5   :  { %v38_v5 = vrot.slane %v37_v4, 4  ;;  %v226_v25 = vld [vmem:[%s352_s3] ss:$0 sm:$0xff] }
   0x6   :  { %v225_v27 = vld [vmem:[%s353_s2] ss:$0 sm:$0xff] }
   0x7   :  { %v39_v6 = vadd.f32 %v38_v5, %v37_v4  ;;  %v227_v28 = vld [vmem:[%s354_s4] ss:$0 sm:$0xff] }
   0x8   :  { %v228_v37 = vld [vmem:[%s355_s6] ss:$0 sm:$0xff] }
   0x9   :  { %v40_v7 = vrot.slane %v39_v6, 2  ;;  %v231_v38 = vld [vmem:[%s356_s8] ss:$0 sm:$0xff] }
   0xb   :  { %v41_v8 = vadd.f32 %v40_v7, %v39_v6 }
   0xd   :  { %v42_v9 = vrot.slane %v41_v8, 1 }
   0xf   :  { %v43_v10 = vadd.f32 %v42_v9, %v41_v8 }
  0x11   :  { %v45_v11 = vmul.f32 0.5, %v43_v10 }
  0x13   :  { %v46_v12 = vsub.f32 %v35_v3, %v45_v11 }
  0x15   :  { %v47_v13 = vmul.f32 %v46_v12, %v46_v12 }
  0x17   :  { %v48_v14 = vsel %vm36_vm0, %v47_v13, 0.0 }
  0x18   :  { %v49_v15 = vrot.slane %v48_v14, 4 }
  0x1a   :  { %v50_v16 = vadd.f32 %v49_v15, %v48_v14 }
  0x1c   :  { %v51_v17 = vrot.slane %v50_v16, 2 }
  0x1e   :  { %v52_v18 = vadd.f32 %v51_v17, %v50_v16 }
  0x20   :  { %v53_v19 = vrot.slane %v52_v18, 1 }
  0x22   :  { %v54_v20 = vadd.f32 %v53_v19, %v52_v18 }
  0x24   :  { %v55_v21 = vmul.f32 0.5, %v54_v20 }
  0x26   :  { %v56_v22 = vadd.f32 1e-05, %v55_v21 }
  0x28   :  { %254 = vrsqrt.f32 %v56_v22 }
  0x35   :  { %v255_v23 = vpop.eup %254 }
  0x36   :  { %v58_v26 = vmul.f32 %v255_v23, %v46_v12 }
  0x38   :  { %v66_v29 = vmul.f32 %v224_v24, %v58_v26  ;;  %v84_v30 = vmul.f32 %v226_v25, %v58_v26 }
  0x3a   :  { %v74_v31 = vadd.f32 %v225_v27, %v66_v29  ;;  %v92_v32 = vadd.f32 %v227_v28, %v84_v30 }
  0x3c   :  { %v75_v33 = vmax.f32 %v74_v31, 0.0  ;;  %v93_v34 = vmax.f32 %v92_v32, 0.0 }
  0x3e   :  { %v76_v35 = vpack.c.bf16 %v75_v33, %v75_v33  ;;  %v94_v36 = vpack.c.bf16 %v93_v34, %v93_v34 }
  0x40   :  { %241 = vmatmul.mubr.msk.bf16.vlgmr.msra.gmra.mxu0 %vm110_vm2, %v76_v35  ;;  %247 = vmatmul.mubr.msk.bf16.vlgmr.msra.gmra.mxu1 %vm110_vm2, %v94_v36 }
 0x100   :  { %v148_v39 = vpop.f32.mrf.mxu0  ;;  %v208_v40 = vpop.f32.mrf.mxu1 }
 0x101   :  { %v149_v41 = vadd.f32 %v228_v37, %v148_v39  ;;  %v209_v42 = vadd.f32 %v231_v38, %v208_v40 }
 0x102   :  { %v242_v43 = vpop.f32.mrf.mxu0  ;;  %v248_v44 = vpop.f32.mrf.mxu1 }
 0x103   :  { %155 = vst.msk [vmem:[%s357_s9] sm:$0x3] %vm154_vm3, %v149_v41 }
 0x104   :  { %215 = vst.msk [vmem:[%s358_s10] sm:$0x3] %vm214_vm4, %v209_v42  ;;  %v151_v45 = vpop.f32.mrf.mxu0  ;;  %v211_v46 = vpop.f32.mrf.mxu1 }
 0x106   :  { %v243_v47 = vpop.f32.mrf.mxu0  ;;  %v249_v48 = vpop.f32.mrf.mxu1 }

// kernel: concat_resnet_block.6
= control target key start
LH: loop header
LB: loop body
LE: loop exit
PB: predicated region body
PF: predicated region fallthrough
CT: control target
= control target key end

     0   :  { %s728_s21 = smov 0   ;;  %s730_s22 = smov 0   ;;  %s818_s0 = inlined_call_operand.vmem [shape: f32[2,64,32], index: 0, kind: input, shape index: {}]   ;;  %s819_s1 = inlined_call_operand.vmem [shape: f32[1,32], index: 1, kind: input, shape index: {}]   ;;  %s820_s2 = inlined_call_operand.vmem [shape: f32[1,32], index: 2, kind: input, shape index: {}]   ;;  %s821_s3 = inlined_call_operand.vmem [shape: bf16[32,48], index: 3, kind: input, shape index: {}]   ;;  %s822_s4 = inlined_call_operand.vmem [shape: f32[2,1,48], index: 4, kind: input, shape index: {}]   ;;  %s823_s5 = inlined_call_operand.vmem [shape: f32[4,1,48], index: 5, kind: output, shape index: {0}]   ;;  %s824_s6 = inlined_call_operand.vmem [shape: f32[4,1,48], index: 6, kind: output, shape index: {1}]  }
   0x1   :  { %s732_s23 = smov 0   ;;  %s734_s24 = smov 0  }
   0x2   :  { %s736_s25 = smov 0  }
   0x3 LB: > { %s26_s26 = sadd.s32 1, %s683_s23  ;;  %s29_s27 = sadd.s32 1, %s687_s24  ;;  %s691_s25 = sphi %s736_s25, %s17_s25   ;;  %s687_s24 = sphi %s734_s24, %s828_s24   ;;  %s683_s23 = sphi %s732_s23, %s827_s23   ;;  %s679_s22 = sphi %s730_s22, %s826_s22   ;;  %s675_s21 = sphi %s728_s21, %s825_s21  }
   0x4   : > { %p27_p0 = scmp.ge.s32.totalorder %s26_s26, 2  ;;  %p584_p1 = scmp.ge.s32.totalorder %s691_s25, 1 }
   0x5   : > { %p250_p2 = scmp.lt.s32.totalorder %s691_s25, 5 }
   0x6   : > { %s830_s26 = smov (%p27_p0, %s26_s26), 0  ;;  %s832_s27 = smov (!%p27_p0, %s29_s27), %s687_s24 }
   0x7   : > { %p251_p3 = pnand %p584_p1, %p250_p2  ;;  %p31_p4 = scmp.ge.s32.totalorder %s832_s27, 2 }
   0x8   : > { %s585_s30 = sshll.u32 (!%p251_p3), %s675_s21, 2  ;;  %p293_p5 = scmp.lt.s32.totalorder (!%p251_p3), %s679_s22, 1 }
   0x9   : > { %s834_s27 = smov (%p31_p4, %s832_s27), 0  ;;  %254 = sbr.rel (%p251_p3) target bundleno = 253 (0xfd), region = 40 }
   0xa   : > { %p295_p6 = scmp.lt.s32.totalorder (!%p251_p3), %s585_s30, 7 }
   0xe   : > { %v651_v0 = vld [vmem:[%s821_s3 + $0x8] sm:$0xff]   ;;  %v652_v1 = vld [vmem:[%s821_s3] sm:$0xff]   ;;  %s771_s9 = scalar_select %p293_p5, %s679_s22, 1  ;;  %vm375_vm0 = vcmask 261120   ;;  %vm431_vm1 = vcmask 392192   ;;  %vm445_vm2 = vcmask 385024  }
   0xf   : > { %603 = vmatprep.subr.bf16.mxu0 %v651_v0  ;;  %s836_s30 = smov (!%p295_p6, %s585_s30), 7  ;;  %v590_v2 = vld [vmem:[%s819_s1] ss:$0 sm:$0xff] }
  0x10   : > { %604 = vmatpush3.bf16.msra.mxu0 %v651_v0  ;;  %s586_s10 = sshll.u32 %s771_s9, 3  ;;  %v591_v3 = vld [vmem:[%s820_s2] ss:$0 sm:$0xff]  ;;  %s304_s29 = scalar_lea.vmem %s822_s4, %s771_s9 }
  0x11   : > { %605 = vmatprep.subr.bf16.mxu0 %v652_v1  ;;  %s298_s11 = sadd.s32 %s586_s10, %s836_s30  ;;  %v592_v23 = vld [vmem:[%s304_s29] ss:$0 sm:$0xff]  ;;  %s588_s30 = sshll.u32 %s679_s22, 1 }
  0x12   : > { %s587_s12 = sshll.u32 %s298_s11, 3  ;;  %s306_s7 = sadd.s32 %s675_s21, %s588_s30 }
  0x13   : > { %s300_s17 = scalar_lea.vmem %s818_s0, %s587_s12  ;;  %p307_p7 = scmp.lt.s32.totalorder %s306_s7, 3 }
  0x14   : > { %606 = vmatpush3.bf16.msra.mxu0 %v652_v1  ;;  %v320_v4 = vld [vmem:[%s300_s17] sm:$0xff]  ;;  %v321_v5 = vld [vmem:[%s300_s17 + $0x8] sm:$0xff]  ;;  %v322_v6 = vld [vmem:[%s300_s17 + $0x10] sm:$0xff] }
  0x15   : > { %v331_v7 = vmul.f32 %v590_v2, %v320_v4  ;;  %v332_v8 = vmul.f32 %v590_v2, %v321_v5  ;;  %v323_v9 = vld [vmem:[%s300_s17 + $0x18] sm:$0xff]  ;;  %v333_v10 = vmul.f32 %v590_v2, %v322_v6  ;;  %s838_s7 = smov (!%p307_p7, %s306_s7), 3 }
  0x16   : > { %v334_v11 = vmul.f32 %v590_v2, %v323_v9  ;;  %s309_s21 = scalar_lea.vmem %s823_s5, %s838_s7  ;;  %s316_s11 = scalar_lea.vmem %s824_s6, %s838_s7 }
  0x17   : > { %v342_v12 = vadd.f32 %v591_v3, %v331_v7  ;;  %v343_v13 = vadd.f32 %v591_v3, %v332_v8  ;;  %v344_v14 = vadd.f32 %v591_v3, %v333_v10 }
  0x18   : > { %v345_v15 = vadd.f32 %v591_v3, %v334_v11 }
  0x19   : > { %v346_v16 = vmax.f32 %v342_v12, 0.0  ;;  %v347_v17 = vmax.f32 %v343_v13, 0.0  ;;  %v348_v18 = vmax.f32 %v344_v14, 0.0 }
  0x1a   : > { %v349_v19 = vmax.f32 %v345_v15, 0.0 }
  0x1b   : > { %v350_v20 = vpack.c.bf16 %v347_v17, %v346_v16 }
  0x1c   : > { %v351_v21 = vpack.c.bf16 %v349_v19, %v348_v18 }
  0x1d   : > { %607 = vmatprep.mubr.msk.bf16.mxu0 %vm375_vm0, %v350_v20 }
  0x1e   : > { %608 = vmatmul.mubr.msk.bf16.vlgmr.msra.gmra.mxu0 %vm375_vm0, %v351_v21 }
  0xde   : > { %v609_v22 = vpop.f32.mrf.mxu0 }
  0xdf   : > { %v425_v27 = vadd.f32 %v609_v22, %v592_v23 }
  0xe0   : > { %v416_v24 = vpop.f32.mrf.mxu0 }
  0xe1   : > { %v417_v25 = vadd.f32 %v592_v23, %v416_v24  ;;  %v449_v32 = vmul.f32 %v425_v27, %v425_v27  ;;  %v435_v37 = vsel %vm431_vm1, %v425_v27, 0.0 }
  0xe2   : > { %v610_v26 = vpop.f32.mrf.mxu0 }
  0xe3   : > { %v447_v29 = vmul.f32 %v417_v25, %v417_v25  ;;  %v428_v30 = vadd.f32 %v610_v26, %v592_v23  ;;  %v432_v33 = vsel %vm431_vm1, %v417_v25, 0.0  ;;  %v454_v43 = vsel %vm431_vm1, %v449_v32, 0.0 }
  0xe4   : > { %v419_v28 = vpop.f32.mrf.mxu0 }
  0xe5   : > { %v420_v31 = vadd.f32 %v592_v23, %v419_v28  ;;  %v451_v38 = vsel %vm431_vm1, %v447_v29, 0.0  ;;  %v450_v39 = vmul.f32 %v428_v30, %v428_v30  ;;  %v437_v44 = vsel %vm431_vm1, %v428_v30, 0.0 }
  0xe7   : > { %v433_v34 = vsel %vm431_vm1, %v420_v31, 0.0  ;;  %v448_v35 = vmul.f32 %v420_v31, %v420_v31  ;;  %v456_v47 = vsel %vm431_vm1, %v450_v39, 0.0 }
  0xe8   : > { %v434_v36 = vadd.f32 %v433_v34, %v432_v33 }
  0xe9   : > { %v452_v40 = vsel %vm431_vm1, %v448_v35, 0.0 }
  0xea   : > { %v436_v41 = vadd.f32 %v435_v37, %v434_v36  ;;  %v453_v42 = vadd.f32 %v452_v40, %v451_v38 }
  0xec   : > { %v438_v45 = vadd.f32 %v437_v44, %v436_v41  ;;  %v455_v46 = vadd.f32 %v454_v43, %v453_v42 }
  0xee   : > { %v439_v48 = vrot.slane %v438_v45, 4  ;;  %v457_v49 = vadd.f32 %v456_v47, %v455_v46 }
  0xf0   : > { %v440_v50 = vadd.f32 %v439_v48, %v438_v45  ;;  %v458_v51 = vrot.slane %v457_v49, 4 }
  0xf2   : > { %v441_v52 = vrot.slane %v440_v50, 2  ;;  %v459_v53 = vadd.f32 %v458_v51, %v457_v49 }
  0xf4   : > { %v442_v54 = vadd.f32 %v441_v52, %v440_v50  ;;  %v460_v55 = vrot.slane %v459_v53, 2 }
  0xf6   : > { %v443_v56 = vrot.slane %v442_v54, 1  ;;  %v461_v57 = vadd.f32 %v460_v55, %v459_v53 }
  0xf8   : > { %v444_v58 = vadd.f32 %v443_v56, %v442_v54  ;;  %v462_v59 = vrot.slane %v461_v57, 1 }
  0xfa   : > { %446 = vst.msk [vmem:[%s309_s21] sm:$0x1] %vm445_vm2, %v444_v58  ;;  %v463_v60 = vadd.f32 %v462_v59, %v461_v57 }
  0xfc   : > { %464 = vst.msk [vmem:[%s316_s11] sm:$0x1] %vm445_vm2, %v463_v60 }
  0xfd PF: > { %s17_s25 = sadd.s32 1, %s691_s25   ;;  %s825_s21 = smov %s683_s23 }
  0xfe   : > { %p14_p8 = scmp.ge.s32.totalorder %s17_s25, 6   ;;  %s826_s22 = smov %s687_s24 }
  0xff   : > { %s827_s23 = smov %s830_s26  ;;  %s828_s24 = smov %s834_s27 }
 0x100   :  { %16 = sbr.rel (!%p14_p8) target bundleno = 3 (0x3), region = 85 }

// kernel: concat_resnet_block.7
= control target key start
LH: loop header
LB: loop body
LE: loop exit
PB: predicated region body
PF: predicated region fallthrough
CT: control target
= control target key end

     0   :  { %s1341_s0 = inlined_call_operand.vmem [shape: f32[2,64,32], index: 0, kind: input, shape index: {}]   ;;  %s1342_s1 = inlined_call_operand.vmem [shape: f32[1,32], index: 1, kind: input, shape index: {}]   ;;  %s1343_s2 = inlined_call_operand.vmem [shape: f32[1,32], index: 2, kind: input, shape index: {}]   ;;  %s1344_s3 = inlined_call_operand.vmem [shape: bf16[32,48], index: 3, kind: input, shape index: {}]   ;;  %s1345_s4 = inlined_call_operand.vmem [shape: f32[2,1,48], index: 4, kind: input, shape index: {}]   ;;  %s1346_s5 = inlined_call_operand.vmem [shape: f32[1,48], index: 5, kind: input, shape index: {}]   ;;  %s1347_s6 = inlined_call_operand.vmem [shape: f32[1,48], index: 6, kind: input, shape index: {}]   ;;  %s1348_s7 = inlined_call_operand.vmem [shape: bf16[48,64], index: 7, kind: input, shape index: {}]   ;;  %s1349_s8 = inlined_call_operand.vmem [shape: f32[2,1,64], index: 8, kind: input, shape index: {}]   ;;  %s1350_s9 = inlined_call_operand.vmem [shape: bf16[32,64], index: 9, kind: input, shape index: {}]   ;;  %s1351_s10 = inlined_call_operand.hbm [shape: f32[2,64,64], index: 10, kind: output, shape index: {}]  }
   0x1   :  { %1356 = sst [smem:[#allocation9_spill]] %s1344_s3 }
   0x2   :  { %15 = vsyncpa [#allocation3], 0 }
   0x3   :  { %17 = vsyncpa [#allocation3 + $0x1], 0  ;;  %s1143_s13 = smov 0   ;;  %s1145_s14 = smov 0  }
   0x4   :  { %s1147_s15 = smov 0   ;;  %s1149_s16 = smov 0  }
   0x5   :  { %s1151_s17 = smov 0   ;;  %s1153_s18 = smov 0  }
   0x6   :  { %s1155_s19 = smov 0   ;;  %s1157_s20 = smov 0  }
   0x7 LB: > { %1357 = sst [smem:[#allocation5_spill]] %s1075_s18  ;;  %s838_s21 = sadd.s32 4294967295, %s1083_s20   ;;  %s1083_s20 = sphi %s1157_s20, %s23_s20   ;;  %s1079_s19 = sphi %s1155_s19, %s1367_s19   ;;  %s1075_s18 = sphi %s1153_s18, %s1366_s18   ;;  %s1071_s17 = sphi %s1151_s17, %s1365_s17   ;;  %s1067_s16 = sphi %s1149_s16, %s1364_s16   ;;  %s1063_s15 = sphi %s1147_s15, %s1370_s15   ;;  %s1059_s14 = sphi %s1145_s14, %s1369_s14   ;;  %s1055_s13 = sphi %s1143_s13, %s1368_s13  }
   0x8   : > { %1358 = sst [smem:[#allocation6_spill]] %s1079_s19  ;;  %s839_s22 = sadd.s32 4294967294, %s1083_s20  }
   0x9   : > { %s32_s23 = sadd.s32 1, %s1075_s18  ;;  %s35_s24 = sadd.s32 1, %s1079_s19 }
   0xa   : > { %p33_p0 = scmp.ge.s32.totalorder %s32_s23, 2  ;;  %p281_p1 = scmp.ne.s32.totalorder %s1063_s15, %s1059_s14 }
   0xb   : > { %p282_p2 = scmp.eq.s32.totalorder %s838_s21, 3  ;;  %p287_p5 = scmp.ne.s32.totalorder %s1059_s14, %s1055_s13 }
   0xc   : > { %s1372_s23 = smov (%p33_p0, %s32_s23), 0  ;;  %s1374_s24 = smov (!%p33_p0, %s35_s24), %s1079_s19 }
   0xd   : > { %1359 = sst [smem:[#allocation7_spill]] %s1372_s23  ;;  %s267_s25 = ssub.s32 %s1075_s18, %s1372_s23 }
   0xe   : > { %p1194_p3 = por %p282_p2, %p281_p1  ;;  %p37_p4 = scmp.ge.s32.totalorder %s1374_s24, 2 }
   0xf   : > { %p288_p6 = scmp.eq.s32.totalorder %s839_s22, 3  ;;  %p842_p7 = scmp.ge.s32.totalorder %s1083_s20, 1 }
  0x10   : > { %s1376_s24 = smov (%p37_p4, %s1374_s24), 0  ;;  %p352_p9 = scmp.lt.s32.totalorder %s1083_s20, 5 }
  0x11   : > { %1361 = sst [smem:[#allocation8_spill]] %s1376_s24  ;;  %p1203_p8 = por %p288_p6, %p287_p5 }
  0x12   : > { %s266_s28 = ssub.s32 %s1079_s19, %s1376_s24  ;;  %s271_s29 = sadd.s32 1, %s1063_s15 }
  0x13   : > { %s268_s30 = sor.u32 %s267_s25, %s266_s28  ;;  %p353_p10 = pnand %p842_p7, %p352_p9 }
  0x14   : > { %p269_p11 = scmp.eq.s32.totalorder %s268_s30, 0  ;;  %s1363_s3 = sld [smem:[#allocation9_spill]] (!%p353_p10) }
  0x15   : > { %356 = sbr.rel (%p353_p10) target bundleno = 469 (0x1d5), region = 60  ;;  %s1218_s22 = sshll.u32 (!%p353_p10), %s1067_s16, 2 }
  0x16   : > { %s1212_s11 = scalar_select %p269_p11, %s1063_s15, %s271_s29  }
  0x17   : > { %p401_p12 = scmp.lt.s32.totalorder (!%p353_p10), %s1071_s17, 1  ;;  %p403_p13 = scmp.lt.s32.totalorder (!%p353_p10), %s1218_s22, 7 }
  0x18   : > { %s397_s18 = sand.u32 (!%p353_p10), 1, %s1059_s14   ;;  %s868_s23 = sshll.u32 (!%p353_p10), %s1071_s17, 3 }
  0x19   : > { %s843_s19 = sshll.u32 (!%p353_p10), %s397_s18, 5  ;;  %s1085_s12 = smov (!%p353_p10), [#allocation2]  }
  0x1a   : > { %v984_v0 = vld [vmem:[%s1363_s3 + $0x8] sm:$0xff]   ;;  %v985_v1 = vld [vmem:[%s1363_s3] sm:$0xff]   ;;  %s1226_s25 = scalar_select %p401_p12, %s1071_s17, 1  ;;  %vm473_vm0 = vcmask 261120   ;;  %v986_v22 = vld [vmem:[%s1348_s7 + $0x10] sm:$0xff]   ;;  %vm588_vm1 = vcmask 392192  }
  0x1b   : > { %885 = vmatprep.subr.bf16.mxu0 %v984_v0  ;;  %s404_s28 = scalar_select %p403_p13, %s1218_s22, 7  ;;  %v847_v2 = vld [vmem:[%s1342_s1] ss:$0 sm:$0xff]  ;;  %v987_v23 = vld [vmem:[%s1350_s9 + $0x8] sm:$0xff]   ;;  %893 = vmatprep.subr.bf16.mxu1 %v986_v22  ;;  %vm717_vm2 = vcmask 523264  }
  0x1c   : > { %886 = vmatpush3.bf16.msra.mxu0 %v984_v0  ;;  %s845_s29 = sshll.u32 %s1226_s25, 3  ;;  %v848_v3 = vld [vmem:[%s1343_s2] ss:$0 sm:$0xff]  ;;  %894 = vmatpush3.bf16.msra.mxu1 %v986_v22  ;;  %v988_v24 = vld [vmem:[%s1348_s7 + $0x8] sm:$0xff]   ;;  %s412_s24 = scalar_lea.vmem %s1345_s4, %s1226_s25 }
  0x1d   : > { %887 = vmatprep.subr.bf16.mxu0 %v985_v1  ;;  %s406_s30 = sadd.s32 %s845_s29, %s404_s28  ;;  %v989_v25 = vld [vmem:[%s1350_s9] sm:$0xff]   ;;  %895 = vmatprep.subr.bf16.mxu1 %v988_v24  ;;  %s415_s21 = scalar_lea.vmem %s1349_s8, %s1226_s25 }
  0x1e   : > { %s846_s16 = sshll.u32 %s406_s30, 3  ;;  %v990_v27 = vld [vmem:[%s1348_s7] sm:$0xff]   ;;  %s399_s28 = scalar_lea.vmem [#allocation2], %s843_s19 }
  0x1f   : > { %s408_s3 = scalar_lea.vmem %s1341_s0, %s846_s16  ;;  %v849_v29 = vld [vmem:[%s412_s24] ss:$0 sm:$0xff]  ;;  %s735_s24 = sadd.s32 %s868_s23, %s1218_s22 }
  0x20   : > { %888 = vmatpush3.bf16.msra.mxu0 %v985_v1  ;;  %v418_v4 = vld [vmem:[%s408_s3] sm:$0xff]  ;;  %v419_v5 = vld [vmem:[%s408_s3 + $0x8] sm:$0xff]  ;;  %v420_v6 = vld [vmem:[%s408_s3 + $0x10] sm:$0xff]  ;;  %896 = vmatpush3.bf16.msra.mxu1 %v988_v24  ;;  %s738_s25 = sshll.u32 %s399_s28, 4  ;;  %s1290_s30 = scalar_lea.sflag [#allocation3], %s397_s18  ;;  %s1284_s25 = int_to_ptr.vmem [resolvable:$true] %s738_s25 }
  0x21   : > { %v429_v7 = vmul.f32 %v847_v2, %v418_v4  ;;  %v430_v8 = vmul.f32 %v847_v2, %v419_v5  ;;  %v421_v9 = vld [vmem:[%s408_s3 + $0x18] sm:$0xff]  ;;  %v431_v10 = vmul.f32 %v847_v2, %v420_v6  ;;  %903 = vmatprep.subr.bf16.mxu0 %v987_v23  ;;  %v644_v26 = vpack.c.bf16 %v419_v5, %v418_v4  ;;  %v854_v33 = vld [vmem:[%s1346_s5] ss:$0 sm:$0xff]  ;;  %s869_s3 = sshll.u32 %s735_s24, 7  ;;  %s991_s16 = scalar_lea.vmem %s1284_s25, 512 }
  0x22   : > { %v432_v11 = vmul.f32 %v847_v2, %v421_v9  ;;  %v645_v28 = vpack.c.bf16 %v421_v9, %v420_v6  ;;  %897 = vmatprep.subr.bf16.mxu1 %v990_v27  ;;  %v855_v40 = vld [vmem:[%s1347_s6] ss:$0 sm:$0xff]  ;;  %s1281_s22 = scalar_lea.hbm %s1351_s10, %s869_s3  ;;  %p992_p0 = scmp.ne.s32.totalorder %s1284_s25, %s991_s16 }
  0x23   : > { %v440_v12 = vadd.f32 %v848_v3, %v429_v7  ;;  %v441_v13 = vadd.f32 %v848_v3, %v430_v8  ;;  %v442_v14 = vadd.f32 %v848_v3, %v431_v10  ;;  %v856_v55 = vld [vmem:[%s415_s21] ss:$0 sm:$0xff]  ;;  %s995_s21 = sshll.u32 %s1085_s12, 4  ;;  %s996_s21 = int_to_ptr.vmem [resolvable:$false] %s995_s21 }
  0x24   : > { %v443_v15 = vadd.f32 %v848_v3, %v432_v11  ;;  %898 = vmatpush3.bf16.msra.mxu1 %v990_v27  ;;  %p993_p1 = pnand %p992_p0, %p1194_p3  ;;  %s997_s23 = scalar_lea.vmem %s996_s21, 1024 }
  0x25   : > { %v444_v16 = vmax.f32 %v440_v12, 0.0  ;;  %v445_v17 = vmax.f32 %v441_v13, 0.0  ;;  %v446_v18 = vmax.f32 %v442_v14, 0.0  ;;  %p998_p4 = scmp.lt.s32.totalorder %s1284_s25, %s996_s21  ;;  %p999_p5 = scmp.lt.s32.totalorder %s997_s23, %s991_s16 }
  0x26   : > { %v447_v19 = vmax.f32 %v443_v15, 0.0  ;;  %p994_p2 = pneg %p993_p1 }
  0x27   : > { %v448_v20 = vpack.c.bf16 %v445_v17, %v444_v16  ;;  %p1000_p6 = por %p999_p5, %p998_p4 }
  0x28   : > { %v449_v21 = vpack.c.bf16 %v447_v19, %v446_v18 }
  0x29   : > { %889 = vmatprep.mubr.msk.bf16.mxu0 %vm473_vm0, %v448_v20  ;;  %p1001_p7 = pnand %p1000_p6, %p994_p2 }
  0x2a   : > { %890 = vmatmul.mubr.msk.bf16.vlgmr.msra.gmra.mxu0 %vm473_vm0, %v449_v21 }
  0x2b   : > { %904 = vmatpush3.bf16.msra.mxu0 %v987_v23  ;;  %907 = vmatprep.mubr.msk.bf16.mxu0 %vm473_vm0, %v644_v26 }
  0x2c   : > { %905 = vmatprep.subr.bf16.mxu0 %v989_v25 }
  0x2f   : > { %906 = vmatpush3.bf16.msra.mxu0 %v989_v25 }
  0x32   : > { %908 = vmatmul.mubr.msk.bf16.vlgmr.msra.gmra.mxu0 %vm473_vm0, %v645_v28 }
  0xea   : > { %v891_v30 = vpop.f32.mrf.mxu0 }
  0xeb   : > { %v523_v31 = vadd.f32 %v891_v30, %v849_v29 }
  0xec   : > { %v514_v32 = vpop.f32.mrf.mxu0 }
  0xed   : > { %v515_v34 = vadd.f32 %v849_v29, %v514_v32  ;;  %v538_v38 = vmul.f32 %v854_v33, %v523_v31 }
  0xee   : > { %v892_v35 = vpop.f32.mrf.mxu0 }
  0xef   : > { %v536_v36 = vmul.f32 %v854_v33, %v515_v34  ;;  %v526_v37 = vadd.f32 %v892_v35, %v849_v29  ;;  %v549_v46 = vadd.f32 %v855_v40, %v538_v38 }
  0xf0   : > { %v517_v39 = vpop.f32.mrf.mxu0 }
  0xf1   : > { %v539_v41 = vmul.f32 %v854_v33, %v526_v37  ;;  %v518_v42 = vadd.f32 %v849_v29, %v517_v39  ;;  %v547_v45 = vadd.f32 %v855_v40, %v536_v36  ;;  %v553_v51 = vmax.f32 %v549_v46, 0.0 }
  0xf2   : > { %v909_v54 = vpop.f32.mrf.mxu0 }
  0xf3   : > { %v550_v43 = vadd.f32 %v855_v40, %v539_v41  ;;  %v537_v44 = vmul.f32 %v854_v33, %v518_v42  ;;  %v551_v49 = vmax.f32 %v547_v45, 0.0 }
  0xf4   : > { %v702_v56 = vpop.f32.mrf.mxu0 }
  0xf5   : > { %v548_v47 = vadd.f32 %v855_v40, %v537_v44  ;;  %v554_v48 = vmax.f32 %v550_v43, 0.0 }
  0xf6   : > { %v910_v62 = vpop.f32.mrf.mxu0 }
  0xf7   : > { %v552_v50 = vmax.f32 %v548_v47, 0.0  ;;  %v556_v53 = vpack.c.bf16 %v554_v48, %v553_v51 }
  0xf8   : > { %v705_v5 = vpop.f32.mrf.mxu0 }
  0xf9   : > { %v555_v52 = vpack.c.bf16 %v552_v50, %v551_v49 }
  0xfb   : > { %899 = vmatprep.mubr.msk.bf16.mxu1 %vm588_vm1, %v555_v52 }
  0xfc   : > { %900 = vmatmul.mubr.msk.bf16.vlgmr.msra.gmra.mxu1 %vm588_vm1, %v556_v53 }
 0x1bc   : > { %v901_v57 = vpop.f32.mrf.mxu1 }
 0x1bd   : > { %v638_v58 = vadd.f32 %v901_v57, %v856_v55 }
 0x1be   : > { %v629_v59 = vpop.f32.mrf.mxu1 }
 0x1bf   : > { %v711_v60 = vadd.f32 %v909_v54, %v638_v58  ;;  %v630_v61 = vadd.f32 %v856_v55, %v629_v59 }
 0x1c0   : > { %v902_v63 = vpop.f32.mrf.mxu1 }
 0x1c1   : > { %720 = vst.msk [vmem:[%s399_s28 + $0x10] sm:$0xff] %vm717_vm2, %v711_v60  ;;  %v703_v0 = vadd.f32 %v702_v56, %v630_v61  ;;  %v641_v1 = vadd.f32 %v902_v63, %v856_v55 }
 0x1c2   : > { %v632_v2 = vpop.f32.mrf.mxu1 }
 0x1c3   : > { %718 = vst.msk [vmem:[%s399_s28] sm:$0xff] %vm717_vm2, %v703_v0  ;;  %v714_v3 = vadd.f32 %v910_v62, %v641_v1  ;;  %v633_v4 = vadd.f32 %v856_v55, %v632_v2 }
 0x1c5   : > { %721 = vst.msk [vmem:[%s399_s28 + $0x18] sm:$0xff] %vm717_vm2, %v714_v3  ;;  %v706_v6 = vadd.f32 %v705_v5, %v633_v4 }
 0x1c7   : > { %719 = vst.msk [vmem:[%s399_s28 + $0x8] sm:$0xff] %vm717_vm2, %v706_v6 }
 0x1c8   : > { %1004 = shalt.err (!%p1001_p7)
}
 0x1c9   : > { %s1005_s18 = scalar_lea.hbm %s1281_s22, 512  ;;  %s1009_s3 = scalar_lea.hbm %s1351_s10, 2048 }
 0x1ca   : > { %p1006_p9 = scmp.ne.s32.totalorder %s1281_s22, %s1005_s18  ;;  %p1010_p12 = scmp.lt.s32.totalorder %s1281_s22, %s1351_s10 }
 0x1cb   : > { %p1011_p13 = scmp.lt.s32.totalorder %s1009_s3, %s1005_s18 }
 0x1cc   : > { %p1007_p10 = pnand %p1006_p9, %p1194_p3 }
 0x1cd   : > { %p1012_p0 = por %p1011_p13, %p1010_p12 }
 0x1ce   : > { %p1008_p11 = pneg %p1007_p10 }
 0x1d0   : > { %p1013_p1 = pnand %p1012_p0, %p1008_p11 }
 0x1d2   : > { %1016 = shalt.err (!%p1013_p1)
}
 0x1d3   : > { %s1086_s29 = smov 128   ;;  %s1087_s16 = smov 8  }
 0x1d4   : > { %911 = dma.vmem_to_hbm [thread:$0]  (%p1194_p3), %s1284_s25, 512, %s1281_s22, %s1290_s30, %s1086_s29, %s1086_s29, %s1087_s16  }
 0x1d5 PF: > { %p917_p2 = scmp.ge.s32.totalorder %s1083_s20, 2  ;;  %s753_s12 = sand.u32 1, %s1055_s13  }
 0x1d6   : > { %s754_s21 = scalar_lea.sflag [#allocation3], %s753_s12 }
 0x1d7   : > { %p914_p4 = pnand %p917_p2, %p1203_p8 }
 0x1d9   : > { %p915_p5 = pneg %p914_p4 }
 0x1db   : > { %1050 = dma.done.wait (%p915_p5), %s754_s21, 512  }
 0x1dc   : > { %1052 = vsyncadd (%p915_p5), %s754_s21, 4294966784  ;;  %s23_s20 = sadd.s32 1, %s1083_s20   ;;  %s1364_s16 = sld [smem:[#allocation5_spill]] }
 0x1dd   : > { %p20_p6 = scmp.ge.s32.totalorder %s23_s20, 6   ;;  %s1365_s17 = sld [smem:[#allocation6_spill]] }
 0x1de   : > { %s1366_s18 = sld [smem:[#allocation7_spill]]  ;;  %s1368_s13 = smov %s1059_s14 }
 0x1df   : > { %s1367_s19 = sld [smem:[#allocation8_spill]]  ;;  %s1369_s14 = smov %s1063_s15 }
 0x1e0   : > { %s1370_s15 = smov %s1212_s11  ;;  %22 = sbr.rel (!%p20_p6) target bundleno = 7 (0x7), region = 101 }
 0x1e5   :  { %759 = vsyncpa [#allocation3], 1 }
 0x1e6   :  { %761 = vsyncpa [#allocation3 + $0x1], 1 }

</bundles_post_ra>
